<compile_context>
chip_gen: v6e
topology: v6e:2x2x1
jax: 0.10.0
libtpu: 0.0.40
codegen_flags: <defaults>
</compile_context>

<pallas_src>
import jax
import jax.numpy as jnp
from jax.experimental import pallas as pl
from jax.experimental.pallas import tpu as pltpu

hidden_size = [20, 20, 20]
input_size = 22
output_size = 4  # synthetic output width for the example

LANE = 128  # padded hidden width inside VMEM = full vreg lane width / MXU tile


def _round_up(n, m):
    return ((n + m - 1) // m) * m


def _pad2(a, rows, cols, dtype):
    out = jnp.zeros((rows, cols), dtype)
    return out.at[: a.shape[0], : a.shape[1]].set(a.astype(dtype))


def _mlp_kernel(x_ref,
                w0_ref, b0_ref,
                w1_ref, b1_ref,
                w2_ref, b2_ref,
                w3_ref, b3_ref,
                o_ref):
    """One (tb, in_dim) batch tile of the 4-layer MLP, fully in VMEM."""
    # Single cast to bf16 for the MXU; no f32 round-trip between layers beyond the
    # bf16 cast needed to feed the next matmul.
    h = x_ref[...].astype(jnp.bfloat16)                 # (tb, 22)
    act = None
    for w_ref, b_ref in ((w0_ref, b0_ref),
                         (w1_ref, b1_ref),
                         (w2_ref, b2_ref),
                         (w3_ref, b3_ref)):
        # bf16 operands on the MXU, f32 accumulate; f32 bias + ReLU on the VPU.
        acc = jnp.dot(h, w_ref[...], preferred_element_type=jnp.float32)
        act = jnp.maximum(acc + b_ref[...], 0.0)        # f32
        h = act.astype(jnp.bfloat16)                    # operand for the next dot
    # Last weight is (128, out_dim), so `act` is already the narrow (tb, out_dim) tile.
    o_ref[...] = act.astype(o_ref.dtype)


def knn_forward(x, params, *, block_batch=2048):
    """x: (B, input_size) float32; params: list of (W_t, b) with W_t (in, out), b (1, out)."""
    B, in_dim = x.shape
    out_dim = params[-1][0].shape[1]
    n_layers = len(params)

    # Batch tile: multiple of 8 sublanes; one grid step for tiny batches, otherwise
    # at least 2 blocks (v7x megacore), capped at block_batch rows for large B.
    b8 = _round_up(B, 8)
    tb = min(block_batch, _round_up(pl.cdiv(b8, 2), 8))
    b_pad = _round_up(B, tb)
    n_blocks = b_pad // tb

    # Only the batch axis is padded (zero rows, discarded afterwards); feature dims
    # keep their real widths in HBM (22-wide input, 4-wide output).
    x_p = x if b_pad == B else _pad2(x, b_pad, in_dim, x.dtype)

    # Per-layer padded feature widths: hidden layers -> 128 lanes (VMEM only),
    # last layer -> real out_dim so the final dot directly produces the output tile.
    feat = [in_dim] + [LANE] * (n_layers - 1) + [out_dim]

    flat_inputs = [x_p]
    in_specs = [pl.BlockSpec((tb, in_dim), lambda i: (i, 0))]
    for li, (w_t, b) in enumerate(params):
        ip, op = feat[li], feat[li + 1]
        w_p = _pad2(w_t, ip, op, jnp.bfloat16)
        b_p = _pad2(b, 1, op, jnp.float32)
        flat_inputs.extend([w_p, b_p])
        # Constant index maps -> weights/biases fetched once, VMEM-resident across steps.
        in_specs.append(pl.BlockSpec((ip, op), lambda i: (0, 0)))
        in_specs.append(pl.BlockSpec((1, op), lambda i: (0, 0)))

    cost = pl.CostEstimate(
        flops=2 * b_pad * sum(feat[i] * feat[i + 1] for i in range(n_layers)),
        transcendentals=0,
        bytes_accessed=(x_p.size * x_p.dtype.itemsize                  # input read
                        + b_pad * out_dim * 4                          # f32 out write
                        + sum(feat[i] * feat[i + 1] * 2 + feat[i + 1] * 4
                              for i in range(n_layers))),              # weights + biases
    )

    out_p = pl.pallas_call(
        _mlp_kernel,
        out_shape=jax.ShapeDtypeStruct((b_pad, out_dim), jnp.float32),
        grid=(n_blocks,),
        in_specs=in_specs,
        out_specs=pl.BlockSpec((tb, out_dim), lambda i: (i, 0)),
        compiler_params=pltpu.CompilerParams(
            dimension_semantics=("parallel",)),
        cost_estimate=cost,
    )(*flat_inputs)

    # Drop batch padding only (no lane padding to slice off anymore).
    return out_p if b_pad == B else out_p[:B]


def init_params(key, input_size, hidden_size, output_size):
    """Deterministic init mimicking nn.Linear's U(-1/sqrt(fan_in), 1/sqrt(fan_in))."""
    dims = [input_size] + list(hidden_size) + [output_size]
    params = []
    for i in range(len(dims) - 1):
        fan_in, fan_out = dims[i], dims[i + 1]
        key, kw, kb = jax.random.split(key, 3)
        bound = 1.0 / jnp.sqrt(jnp.float32(fan_in))
        # stored already transposed: (in, out)
        w_t = jax.random.uniform(kw, (fan_in, fan_out), jnp.float32, -bound, bound)
        b = jax.random.uniform(kb, (1, fan_out), jnp.float32, -bound, bound)
        params.append((w_t, b))
    return params


def reference_forward_mixed(x, params):
    """Same mixed precision as the kernel: bf16 operands, f32 accumulate/bias/ReLU."""
    h = x.astype(jnp.float32)
    for w_t, b in params:
        acc = jnp.dot(h.astype(jnp.bfloat16), w_t.astype(jnp.bfloat16),
                      preferred_element_type=jnp.float32)
        h = jnp.maximum(acc + b, 0.0)
    return h


def reference_forward_f32(x, params):
    """Pure f32 reference matching the original torch module semantics."""
    h = x.astype(jnp.float32)
    for w_t, b in params:
        h = jnp.maximum(h @ w_t + b, 0.0)
    return h


if __name__ == "__main__":
    key = jax.random.PRNGKey(0)
    kx, kp = jax.random.split(key)

    batch = 8
    x = jax.random.normal(kx, (batch, input_size), dtype=jnp.float32)
    params = init_params(kp, input_size, hidden_size, output_size)

    out = knn_forward(x, params)
    out = jax.block_until_ready(out)

    ref_mixed = reference_forward_mixed(x, params)
    ref_f32 = reference_forward_f32(x, params)

    assert out.shape == (batch, output_size)
    # Exact-path check against the identically-quantized reference.
    assert jnp.allclose(out, ref_mixed, atol=1e-4, rtol=1e-4)
    # Sanity check against the original full-f32 torch semantics (bf16 rounding slack).
    assert jnp.allclose(out, ref_f32, atol=5e-2, rtol=5e-2)

    print("KERNEL_OK")
</pallas_src>

<mosaic_0001>
module attributes {stable_mosaic.version = 11 : i64} {
  func.func @_mlp_kernel(%arg0: i32, %arg1: memref<8x22xf32, #tpu.memory_space<vmem>>, %arg2: memref<22x128xbf16, #tpu.memory_space<vmem>>, %arg3: memref<1x128xf32, #tpu.memory_space<vmem>>, %arg4: memref<128x128xbf16, #tpu.memory_space<vmem>>, %arg5: memref<1x128xf32, #tpu.memory_space<vmem>>, %arg6: memref<128x128xbf16, #tpu.memory_space<vmem>>, %arg7: memref<1x128xf32, #tpu.memory_space<vmem>>, %arg8: memref<128x4xbf16, #tpu.memory_space<vmem>>, %arg9: memref<1x4xf32, #tpu.memory_space<vmem>>, %arg10: memref<8x4xf32, #tpu.memory_space<vmem>>) attributes {dimension_semantics = [#tpu.dimension_semantics<parallel>], iteration_bounds = array<i64: 1>, scalar_prefetch = 0 : i64, scratch_operands = 0 : i64, tpu.core_type = #tpu.core_type<tc>, window_params = [{transform_indices = @transform_0, window_bounds = array<i64: 8, 22>}, {pipeline_mode = #tpu.pipeline_mode<synchronous>, transform_indices = @transform_1, window_bounds = array<i64: 22, 128>}, {pipeline_mode = #tpu.pipeline_mode<synchronous>, transform_indices = @transform_2, window_bounds = array<i64: 1, 128>}, {pipeline_mode = #tpu.pipeline_mode<synchronous>, transform_indices = @transform_3, window_bounds = array<i64: 128, 128>}, {pipeline_mode = #tpu.pipeline_mode<synchronous>, transform_indices = @transform_4, window_bounds = array<i64: 1, 128>}, {pipeline_mode = #tpu.pipeline_mode<synchronous>, transform_indices = @transform_5, window_bounds = array<i64: 128, 128>}, {pipeline_mode = #tpu.pipeline_mode<synchronous>, transform_indices = @transform_6, window_bounds = array<i64: 1, 128>}, {pipeline_mode = #tpu.pipeline_mode<synchronous>, transform_indices = @transform_7, window_bounds = array<i64: 128, 4>}, {pipeline_mode = #tpu.pipeline_mode<synchronous>, transform_indices = @transform_8, window_bounds = array<i64: 1, 4>}, {transform_indices = @transform_9, window_bounds = array<i64: 8, 4>}]} {
    %c0 = arith.constant 0 : index
    %c0_0 = arith.constant 0 : index
    %0 = vector.load %arg1[%c0, %c0_0] : memref<8x22xf32, #tpu.memory_space<vmem>>, vector<8x22xf32>
    %1 = arith.truncf %0 : vector<8x22xf32> to vector<8x22xbf16>
    %c0_1 = arith.constant 0 : index
    %c0_2 = arith.constant 0 : index
    %2 = vector.load %arg2[%c0_1, %c0_2] : memref<22x128xbf16, #tpu.memory_space<vmem>>, vector<22x128xbf16>
    %cst = arith.constant dense<0.000000e+00> : vector<8x128xf32>
    %3 = tpu.matmul %1, %2, %cst {dimension_numbers = #tpu.dot_dimension_numbers<[1], [0], [0], [1], [0, 0, 1, 1], [], []>} : vector<8x22xbf16>, vector<22x128xbf16>, vector<8x128xf32> -> vector<8x128xf32>
    %c0_3 = arith.constant 0 : index
    %c0_4 = arith.constant 0 : index
    %4 = vector.load %arg3[%c0_3, %c0_4] : memref<1x128xf32, #tpu.memory_space<vmem>>, vector<1x128xf32>
    %5 = vector.broadcast %4 : vector<1x128xf32> to vector<8x128xf32>
    %6 = arith.addf %3, %5 : vector<8x128xf32>
    %cst_5 = arith.constant 0.000000e+00 : f32
    %7 = vector.broadcast %cst_5 : f32 to vector<8x128xf32>
    %8 = arith.maximumf %6, %7 : vector<8x128xf32>
    %9 = arith.truncf %8 : vector<8x128xf32> to vector<8x128xbf16>
    %c0_6 = arith.constant 0 : index
    %c0_7 = arith.constant 0 : index
    %10 = vector.load %arg4[%c0_6, %c0_7] : memref<128x128xbf16, #tpu.memory_space<vmem>>, vector<128x128xbf16>
    %cst_8 = arith.constant dense<0.000000e+00> : vector<8x128xf32>
    %11 = tpu.matmul %9, %10, %cst_8 {dimension_numbers = #tpu.dot_dimension_numbers<[1], [0], [0], [1], [0, 0, 1, 1], [], []>} : vector<8x128xbf16>, vector<128x128xbf16>, vector<8x128xf32> -> vector<8x128xf32>
    %c0_9 = arith.constant 0 : index
    %c0_10 = arith.constant 0 : index
    %12 = vector.load %arg5[%c0_9, %c0_10] : memref<1x128xf32, #tpu.memory_space<vmem>>, vector<1x128xf32>
    %13 = vector.broadcast %12 : vector<1x128xf32> to vector<8x128xf32>
    %14 = arith.addf %11, %13 : vector<8x128xf32>
    %cst_11 = arith.constant 0.000000e+00 : f32
    %15 = vector.broadcast %cst_11 : f32 to vector<8x128xf32>
    %16 = arith.maximumf %14, %15 : vector<8x128xf32>
    %17 = arith.truncf %16 : vector<8x128xf32> to vector<8x128xbf16>
    %c0_12 = arith.constant 0 : index
    %c0_13 = arith.constant 0 : index
    %18 = vector.load %arg6[%c0_12, %c0_13] : memref<128x128xbf16, #tpu.memory_space<vmem>>, vector<128x128xbf16>
    %cst_14 = arith.constant dense<0.000000e+00> : vector<8x128xf32>
    %19 = tpu.matmul %17, %18, %cst_14 {dimension_numbers = #tpu.dot_dimension_numbers<[1], [0], [0], [1], [0, 0, 1, 1], [], []>} : vector<8x128xbf16>, vector<128x128xbf16>, vector<8x128xf32> -> vector<8x128xf32>
    %c0_15 = arith.constant 0 : index
    %c0_16 = arith.constant 0 : index
    %20 = vector.load %arg7[%c0_15, %c0_16] : memref<1x128xf32, #tpu.memory_space<vmem>>, vector<1x128xf32>
    %21 = vector.broadcast %20 : vector<1x128xf32> to vector<8x128xf32>
    %22 = arith.addf %19, %21 : vector<8x128xf32>
    %cst_17 = arith.constant 0.000000e+00 : f32
    %23 = vector.broadcast %cst_17 : f32 to vector<8x128xf32>
    %24 = arith.maximumf %22, %23 : vector<8x128xf32>
    %25 = arith.truncf %24 : vector<8x128xf32> to vector<8x128xbf16>
    %c0_18 = arith.constant 0 : index
    %c0_19 = arith.constant 0 : index
    %26 = vector.load %arg8[%c0_18, %c0_19] : memref<128x4xbf16, #tpu.memory_space<vmem>>, vector<128x4xbf16>
    %cst_20 = arith.constant dense<0.000000e+00> : vector<8x4xf32>
    %27 = tpu.matmul %25, %26, %cst_20 {dimension_numbers = #tpu.dot_dimension_numbers<[1], [0], [0], [1], [0, 0, 1, 1], [], []>} : vector<8x128xbf16>, vector<128x4xbf16>, vector<8x4xf32> -> vector<8x4xf32>
    %c0_21 = arith.constant 0 : index
    %c0_22 = arith.constant 0 : index
    %28 = vector.load %arg9[%c0_21, %c0_22] : memref<1x4xf32, #tpu.memory_space<vmem>>, vector<1x4xf32>
    %29 = vector.broadcast %28 : vector<1x4xf32> to vector<8x4xf32>
    %30 = arith.addf %27, %29 : vector<8x4xf32>
    %cst_23 = arith.constant 0.000000e+00 : f32
    %31 = vector.broadcast %cst_23 : f32 to vector<8x4xf32>
    %32 = arith.maximumf %30, %31 : vector<8x4xf32>
    %c0_24 = arith.constant 0 : index
    %c0_25 = arith.constant 0 : index
    %33 = vector.load %arg10[%c0_24, %c0_25] : memref<8x4xf32, #tpu.memory_space<vmem>>, vector<8x4xf32>
    tpu.vector_store %arg10[%c0_24, %c0_25], %32 {strides = array<i32>} : memref<8x4xf32, #tpu.memory_space<vmem>>, vector<8x4xf32>,
    return
  }
  func.func @transform_0(%arg0: i32) -> (i32, i32) {
    %c0_i32 = arith.constant 0 : i32
    %c0_i32_0 = arith.constant 0 : i32
    return %arg0, %c0_i32 : i32, i32
  }
  func.func @transform_1(%arg0: i32) -> (i32, i32) {
    %c0_i32 = arith.constant 0 : i32
    %c0_i32_0 = arith.constant 0 : i32
    %c0_i32_1 = arith.constant 0 : i32
    return %c0_i32, %c0_i32_0 : i32, i32
  }
  func.func @transform_2(%arg0: i32) -> (i32, i32) {
    %c0_i32 = arith.constant 0 : i32
    %c0_i32_0 = arith.constant 0 : i32
    %c0_i32_1 = arith.constant 0 : i32
    return %c0_i32, %c0_i32_0 : i32, i32
  }
  func.func @transform_3(%arg0: i32) -> (i32, i32) {
    %c0_i32 = arith.constant 0 : i32
    %c0_i32_0 = arith.constant 0 : i32
    %c0_i32_1 = arith.constant 0 : i32
    return %c0_i32, %c0_i32_0 : i32, i32
  }
  func.func @transform_4(%arg0: i32) -> (i32, i32) {
    %c0_i32 = arith.constant 0 : i32
    %c0_i32_0 = arith.constant 0 : i32
    %c0_i32_1 = arith.constant 0 : i32
    return %c0_i32, %c0_i32_0 : i32, i32
  }
  func.func @transform_5(%arg0: i32) -> (i32, i32) {
    %c0_i32 = arith.constant 0 : i32
    %c0_i32_0 = arith.constant 0 : i32
    %c0_i32_1 = arith.constant 0 : i32
    return %c0_i32, %c0_i32_0 : i32, i32
  }
  func.func @transform_6(%arg0: i32) -> (i32, i32) {
    %c0_i32 = arith.constant 0 : i32
    %c0_i32_0 = arith.constant 0 : i32
    %c0_i32_1 = arith.constant 0 : i32
    return %c0_i32, %c0_i32_0 : i32, i32
  }
  func.func @transform_7(%arg0: i32) -> (i32, i32) {
    %c0_i32 = arith.constant 0 : i32
    %c0_i32_0 = arith.constant 0 : i32
    %c0_i32_1 = arith.constant 0 : i32
    return %c0_i32, %c0_i32_0 : i32, i32
  }
  func.func @transform_8(%arg0: i32) -> (i32, i32) {
    %c0_i32 = arith.constant 0 : i32
    %c0_i32_0 = arith.constant 0 : i32
    %c0_i32_1 = arith.constant 0 : i32
    return %c0_i32, %c0_i32_0 : i32, i32
  }
  func.func @transform_9(%arg0: i32) -> (i32, i32) {
    %c0_i32 = arith.constant 0 : i32
    %c0_i32_0 = arith.constant 0 : i32
    return %arg0, %c0_i32 : i32, i32
  }
}

</mosaic_0001>

<bundles_post_ra>
// kernel: tpu_custom_call.1
= control target key start
LH: loop header
LB: loop body
LE: loop exit
PB: predicated region body
PF: predicated region fallthrough
CT: control target
= control target key end

     0   :  { %14 = vsyncpa [#allocation3], 0  ;;  %s878_s0 = inlined_call_operand.hbm [shape: f32[8,22], index: 0, kind: input, shape index: {}]   ;;  %s879_s1 = inlined_call_operand.hbm [shape: bf16[22,128], index: 1, kind: input, shape index: {}]   ;;  %s880_s2 = inlined_call_operand.vmem [shape: f32[1,128], index: 2, kind: input, shape index: {}]   ;;  %s881_s3 = inlined_call_operand.vmem [shape: bf16[128,128], index: 3, kind: input, shape index: {}]   ;;  %s882_s4 = inlined_call_operand.vmem [shape: f32[1,128], index: 4, kind: input, shape index: {}]   ;;  %s883_s5 = inlined_call_operand.hbm [shape: bf16[128,128], index: 5, kind: input, shape index: {}]   ;;  %s884_s6 = inlined_call_operand.vmem [shape: f32[1,128], index: 6, kind: input, shape index: {}]   ;;  %s885_s7 = inlined_call_operand.vmem [shape: bf16[128,4], index: 7, kind: input, shape index: {}]   ;;  %s886_s8 = inlined_call_operand.vmem [shape: f32[1,4], index: 8, kind: input, shape index: {}]   ;;  %s887_s9 = inlined_call_operand.vmem [shape: f32[8,4], index: 9, kind: output, shape index: {}]  }
   0x1   :  { %15 = vsyncpa [#allocation5], 0  ;;  %s715_s30 = smov [#allocation4]  }
   0x2   :  { %s31_s10 = sshll.u32 %s715_s30, 4  ;;  %s32_s10 = int_to_ptr.vmem [resolvable:$true] %s31_s10 }
   0x3   :  { %s659_s11 = scalar_lea.vmem %s32_s10, 192  ;;  %p664_p1 = scmp.lt.s32.totalorder %s32_s10, %s32_s10 }
   0x4   :  { %p660_p0 = scmp.ne.s32.totalorder %s32_s10, %s659_s11  ;;  %p665_p2 = scmp.lt.s32.totalorder %s659_s11, %s659_s11 }
   0x6   :  { %p666_p3 = por %p665_p2, %p664_p1 }
   0x8   :  { %p667_p4 = pnand %p666_p3, %p660_p0 }
   0xa   :  { %670 = shalt.err (!%p667_p4)
}
   0xb   :  { %s716_s12 = smov 64   ;;  %s717_s13 = smov 4  }
   0xc   :  { %37 = dma.hbm_to_vmem [thread:$0]  %s879_s1, 192, %s32_s10, [#allocation5], %s716_s12, %s716_s12, %s717_s13  }
   0xd   :  { %s718_s16 = smov [#allocation2]   ;;  %s719_s18 = smov [#allocation6]  }
   0xe   :  { %s22_s17 = sshll.u32 %s718_s16, 4  ;;  %s49_s19 = sshll.u32 %s719_s18, 4  ;;  %s23_s17 = int_to_ptr.vmem [resolvable:$true] %s22_s17  ;;  %s50_s19 = int_to_ptr.vmem [resolvable:$true] %s49_s19 }
   0xf   :  { %s679_s20 = scalar_lea.vmem %s23_s17, 128  ;;  %p684_p6 = scmp.lt.s32.totalorder %s23_s17, %s23_s17 }
  0x10   :  { %p680_p5 = scmp.ne.s32.totalorder %s23_s17, %s679_s20  ;;  %p685_p7 = scmp.lt.s32.totalorder %s679_s20, %s679_s20 }
  0x12   :  { %p686_p8 = por %p685_p7, %p684_p6 }
  0x14   :  { %p687_p9 = pnand %p686_p8, %p680_p5 }
  0x16   :  { %690 = shalt.err (!%p687_p9)
}
  0x17   :  { %25 = dma.hbm_to_vmem [thread:$0]  %s878_s0, 128, %s23_s17, [#allocation3]  }
  0x18   :  { %s699_s23 = scalar_lea.vmem %s50_s19, 1024  ;;  %p704_p11 = scmp.lt.s32.totalorder %s50_s19, %s50_s19 }
  0x19   :  { %p700_p10 = scmp.ne.s32.totalorder %s50_s19, %s699_s23  ;;  %p705_p12 = scmp.lt.s32.totalorder %s699_s23, %s699_s23 }
  0x1b   :  { %p706_p13 = por %p705_p12, %p704_p11 }
  0x1d   :  { %p707_p0 = pnand %p706_p13, %p700_p10 }
  0x1f   :  { %710 = shalt.err (!%p707_p0)
}
  0x20   :  { %55 = dma.hbm_to_vmem [thread:$0]  %s883_s5, 1024, %s50_s19, [#allocation5], %s716_s12, %s716_s12, %s717_s13  }
  0x21   :  { %711 = dma.done.wait [#allocation3], 128  }
  0x22   :  { %712 = vsyncadd [#allocation3], 4294967168 }
  0x23   :  { %713 = dma.done.wait [#allocation5], 1216  }
  0x24   :  { %714 = vsyncadd [#allocation5], 4294966080  ;;  %v720_v0 = vmov 0.0   ;;  %vm721_vm0 = vmmov 0   ;;  %vm97_vm1 = vcmask 1042432   ;;  %v626_v2 = vld [vmem:[#allocation4] sm:$0xff]  }
  0x25   :  { %550 = vmatprep.subr.bf16.mxu0 %v720_v0  ;;  %554 = vmatprep.mubr.msk.bf16.mxu0 %vm721_vm0, %v720_v0  ;;  %v625_v1 = vld [vmem:[#allocation4 + $0x8] ss:$0 sps:$4 sm:$0x77]   ;;  %v627_v4 = vld [vmem:[%s881_s3 + $0x38] sm:$0xff]   ;;  %v72_v5 = vld [vmem:[#allocation2] sm:$0xff]  ;;  %vm93_vm2 = vcmask 179200  }
  0x26   :  { %558 = vmatprep.subr.bf16.mxu1 %v720_v0  ;;  %574 = vmatprep.mubr.msk.bf16.mxu1 %vm721_vm0, %v720_v0  ;;  %v99_v3 = vsel %vm97_vm1, %v625_v1, 0  ;;  %v628_v6 = vld [vmem:[%s881_s3 + $0x30] sm:$0xff]   ;;  %v73_v7 = vpack.c.bf16 %v72_v5, %v72_v5  ;;  %v629_v8 = vld [vmem:[%s881_s3 + $0x28] sm:$0xff]   ;;  %v630_v9 = vld [vmem:[%s881_s3 + $0x20] sm:$0xff]   ;;  %vm481_vm3 = vcmask 31744  }
  0x27   :  { %551 = vmatpush3.bf16.msra.mxu0 %v99_v3  ;;  %559 = vmatpush3.bf16.msra.mxu1 %v627_v4  ;;  %v631_v10 = vld [vmem:[%s881_s3 + $0x18] sm:$0xff]   ;;  %v632_v11 = vld [vmem:[%s881_s3 + $0x10] sm:$0xff]   ;;  %v633_v12 = vld [vmem:[%s881_s3 + $0x8] sm:$0xff]  }
  0x28   :  { %552 = vmatprep.subr.bf16.mxu0 %v720_v0  ;;  %560 = vmatprep.subr.bf16.mxu1 %v720_v0  ;;  %v634_v13 = vld [vmem:[%s881_s3] sm:$0xff]   ;;  %v635_v14 = vld [vmem:[#allocation6 + $0x38] sm:$0xff]   ;;  %v638_v17 = vld [vmem:[#allocation6 + $0x20] sm:$0xff]  }
  0x29   :  { %v636_v15 = vld [vmem:[#allocation6 + $0x30] sm:$0xff]   ;;  %v637_v16 = vld [vmem:[#allocation6 + $0x28] sm:$0xff]   ;;  %v639_v18 = vld [vmem:[#allocation6 + $0x18] sm:$0xff]  }
  0x2a   :  { %v640_v19 = vld [vmem:[#allocation6 + $0x10] sm:$0xff]   ;;  %v489_v20 = vld [vmem:[%s880_s2] ss:$0 sm:$0xff]  ;;  %v642_v29 = vld [vmem:[#allocation6] sm:$0xff]  }
  0x2b   :  { %553 = vmatpush3.bf16.msra.mxu0 %v626_v2  ;;  %561 = vmatpush3.bf16.msra.mxu1 %v628_v6  ;;  %v641_v28 = vld [vmem:[#allocation6 + $0x8] sm:$0xff]   ;;  %v644_v31 = vld [vmem:[%s885_s7 + $0x30] sm:$0xff]   ;;  %v645_v32 = vld [vmem:[%s885_s7 + $0x28] sm:$0xff]  }
  0x2c   :  { %578 = vmatprep.subr.bf16.mxu0 %v720_v0  ;;  %562 = vmatprep.subr.bf16.mxu1 %v720_v0  ;;  %v643_v30 = vld [vmem:[%s885_s7 + $0x38] sm:$0xff]   ;;  %v646_v33 = vld [vmem:[%s885_s7 + $0x20] sm:$0xff]   ;;  %v648_v35 = vld [vmem:[%s885_s7 + $0x10] sm:$0xff]  }
  0x2d   :  { %v647_v34 = vld [vmem:[%s885_s7 + $0x18] sm:$0xff]   ;;  %v493_v36 = vld [vmem:[%s882_s4] ss:$0 sm:$0xff]  ;;  %v649_v44 = vld [vmem:[%s885_s7 + $0x8] sm:$0xff]  }
  0x2e   :  { %555 = vmatmul.mubr.msk.bf16.vlgmr.msra.gmra.mxu0 %vm93_vm2, %v73_v7  ;;  %v650_v45 = vld [vmem:[%s885_s7] sm:$0xff]  }
  0x2f   :  { %594 = vmatprep.mubr.msk.bf16.mxu0 %vm721_vm0, %v720_v0  ;;  %563 = vmatpush3.bf16.msra.mxu1 %v629_v8  ;;  %v502_v46 = vld [vmem:[%s884_s6] ss:$0 sm:$0xff] }
  0x30   :  { %564 = vmatprep.subr.bf16.mxu1 %v720_v0  ;;  %579 = vmatpush3.bf16.msra.mxu0 %v635_v14  ;;  %v511_v54 = vld [vmem:[%s886_s8] ss:$0 sm:$0xff] }
  0x31   :  { %580 = vmatprep.subr.bf16.mxu0 %v720_v0 }
  0x33   :  { %565 = vmatpush3.bf16.msra.mxu1 %v630_v9 }
  0x34   :  { %566 = vmatprep.subr.bf16.mxu1 %v720_v0  ;;  %581 = vmatpush3.bf16.msra.mxu0 %v636_v15 }
  0x35   :  { %582 = vmatprep.subr.bf16.mxu0 %v720_v0 }
  0x37   :  { %567 = vmatpush3.bf16.msra.mxu1 %v631_v10 }
  0x38   :  { %568 = vmatprep.subr.bf16.mxu1 %v720_v0  ;;  %583 = vmatpush3.bf16.msra.mxu0 %v637_v16 }
  0x39   :  { %584 = vmatprep.subr.bf16.mxu0 %v720_v0 }
  0x3b   :  { %569 = vmatpush3.bf16.msra.mxu1 %v632_v11 }
  0x3c   :  { %570 = vmatprep.subr.bf16.mxu1 %v720_v0  ;;  %585 = vmatpush3.bf16.msra.mxu0 %v638_v17 }
  0x3d   :  { %586 = vmatprep.subr.bf16.mxu0 %v720_v0 }
  0x3f   :  { %571 = vmatpush3.bf16.msra.mxu1 %v633_v12 }
  0x40   :  { %572 = vmatprep.subr.bf16.mxu1 %v720_v0  ;;  %587 = vmatpush3.bf16.msra.mxu0 %v639_v18 }
  0x41   :  { %588 = vmatprep.subr.bf16.mxu0 %v720_v0 }
  0x43   :  { %573 = vmatpush3.bf16.msra.mxu1 %v634_v13 }
  0x44   :  { %598 = vmatprep.subr.bf16.mxu1 %v720_v0  ;;  %589 = vmatpush3.bf16.msra.mxu0 %v640_v19 }
  0x45   :  { %590 = vmatprep.subr.bf16.mxu0 %v720_v0 }
  0x48   :  { %591 = vmatpush3.bf16.msra.mxu0 %v641_v28 }
  0x49   :  { %592 = vmatprep.subr.bf16.mxu0 %v720_v0 }
  0x4c   :  { %593 = vmatpush3.bf16.msra.mxu0 %v642_v29 }
  0xee   :  { %v135_v21 = vpop.f32.mrf.mxu0 }
  0xef   :  { %v136_v22 = vadd.f32 %v489_v20, %v135_v21 }
  0xf0   :  { %v556_v23 = vpop.f32.mrf.mxu0 }
  0xf1   :  { %v141_v24 = vmax.f32 %v136_v22, 0.0 }
  0xf2   :  { %v138_v25 = vpop.f32.mrf.mxu0 }
  0xf3   :  { %v142_v26 = vpack.c.bf16 %v141_v24, %v141_v24 }
  0xf4   :  { %v557_v27 = vpop.f32.mrf.mxu0 }
  0xf5   :  { %575 = vmatmul.mubr.bf16.vlgmr.msra.gmra.mxu1 %v142_v26 }
  0xf6   :  { %614 = vmatprep.mubr.msk.bf16.mxu1 %vm721_vm0, %v720_v0  ;;  %599 = vmatpush3.bf16.msra.mxu1 %v643_v30 }
  0xf7   :  { %600 = vmatprep.subr.bf16.mxu1 %v720_v0 }
  0xfa   :  { %601 = vmatpush3.bf16.msra.mxu1 %v644_v31 }
  0xfb   :  { %602 = vmatprep.subr.bf16.mxu1 %v720_v0 }
  0xfe   :  { %603 = vmatpush3.bf16.msra.mxu1 %v645_v32 }
  0xff   :  { %604 = vmatprep.subr.bf16.mxu1 %v720_v0 }
 0x102   :  { %605 = vmatpush3.bf16.msra.mxu1 %v646_v33 }
 0x103   :  { %606 = vmatprep.subr.bf16.mxu1 %v720_v0 }
 0x106   :  { %607 = vmatpush3.bf16.msra.mxu1 %v647_v34 }
 0x107   :  { %608 = vmatprep.subr.bf16.mxu1 %v720_v0 }
 0x10a   :  { %609 = vmatpush3.bf16.msra.mxu1 %v648_v35 }
 0x10b   :  { %610 = vmatprep.subr.bf16.mxu1 %v720_v0 }
 0x10e   :  { %611 = vmatpush3.bf16.msra.mxu1 %v649_v44 }
 0x10f   :  { %612 = vmatprep.subr.bf16.mxu1 %v720_v0 }
 0x112   :  { %613 = vmatpush3.bf16.msra.mxu1 %v650_v45 }
 0x1b5   :  { %v248_v37 = vpop.f32.mrf.mxu1 }
 0x1b6   :  { %v249_v38 = vadd.f32 %v493_v36, %v248_v37 }
 0x1b7   :  { %v576_v39 = vpop.f32.mrf.mxu1 }
 0x1b8   :  { %v254_v40 = vmax.f32 %v249_v38, 0.0 }
 0x1b9   :  { %v251_v41 = vpop.f32.mrf.mxu1 }
 0x1ba   :  { %v255_v42 = vpack.c.bf16 %v254_v40, %v254_v40 }
 0x1bb   :  { %v577_v43 = vpop.f32.mrf.mxu1 }
 0x1bc   :  { %595 = vmatmul.mubr.bf16.vlgmr.msra.gmra.mxu0 %v255_v42 }
 0x27c   :  { %v361_v47 = vpop.f32.mrf.mxu0 }
 0x27d   :  { %v362_v48 = vadd.f32 %v502_v46, %v361_v47 }
 0x27e   :  { %v596_v49 = vpop.f32.mrf.mxu0 }
 0x27f   :  { %v367_v50 = vmax.f32 %v362_v48, 0.0 }
 0x280   :  { %v364_v51 = vpop.f32.mrf.mxu0 }
 0x281   :  { %v368_v52 = vpack.c.bf16 %v367_v50, %v367_v50 }
 0x282   :  { %v597_v53 = vpop.f32.mrf.mxu0 }
 0x283   :  { %615 = vmatmul.mubr.bf16.vlgmr.msra.gmra.mxu1 %v368_v52 }
 0x343   :  { %v474_v55 = vpop.f32.mrf.mxu1 }
 0x344   :  { %v475_v56 = vadd.f32 %v511_v54, %v474_v55 }
 0x345   :  { %v616_v57 = vpop.f32.mrf.mxu1 }
 0x346   :  { %v480_v58 = vmax.f32 %v475_v56, 0.0 }
 0x347   :  { %v477_v59 = vpop.f32.mrf.mxu1 }
 0x348   :  { %482 = vst.msk [vmem:[%s887_s9] sm:$0xff] %vm481_vm3, %v480_v58 }
 0x349   :  { %v617_v60 = vpop.f32.mrf.mxu1 }
 0x34a   :  { %487 = vsyncpa [#allocation3], 1 }
 0x34b   :  { %488 = vsyncpa [#allocation5], 1 }

</bundles_post_ra>
